<compile_context>
chip_gen: v7x
topology: tpu7x:2x2x1
jax: 0.10.0
libtpu: 0.0.40
codegen_flags: <defaults>
</compile_context>

<pallas_src>
import functools

import jax
import jax.numpy as jnp
from jax.experimental import pallas as pl
from jax.experimental.pallas import tpu as pltpu


def _mlp_kernel(x_ref, w1_ref, b1_ref, w2_ref, b2_ref, o_ref):
    # fc1 + ReLU: cast streamed f32 rows to bf16 for the MXU; accumulate in f32.
    x = x_ref[...].astype(jnp.bfloat16)
    h = jnp.dot(x, w1_ref[...], preferred_element_type=jnp.float32)
    h = jnp.maximum(h + b1_ref[...], 0.0)           # b1 is (1, 128) -> broadcasts over rows
    # fc2 + ReLU (padded hidden rows of w2 are zero, padded hidden cols of h are zero).
    o = jnp.dot(h.astype(jnp.bfloat16), w2_ref[...],
                preferred_element_type=jnp.float32)
    o_ref[...] = jnp.maximum(o + b2_ref[...], 0.0).astype(o_ref.dtype)


def prepare_params(w1, b1, w2, b2):
    """Pad/convert parameters ONCE (hoisted out of the per-call path).

    w1: (784, 100), b1: (100,), w2: (100, 10), b2: (10,)  ->  lane-dense bf16/f32 operands.
    """
    w1_p = jnp.zeros((784, 128), jnp.bfloat16).at[:, :100].set(w1.astype(jnp.bfloat16))
    b1_p = jnp.zeros((1, 128), jnp.float32).at[:, :100].set(b1.astype(jnp.float32))
    w2_p = jnp.zeros((128, 10), jnp.bfloat16).at[:100, :].set(w2.astype(jnp.bfloat16))
    b2_p = b2.astype(jnp.float32).reshape(1, 10)
    return w1_p, b1_p, w2_p, b2_p


@functools.partial(jax.jit, static_argnames=())
def net_student_forward(x, w1_p, b1_p, w2_p, b2_p):
    """x: any shape whose trailing dims flatten to 784 (e.g. (B, 1, 28, 28)).
    Params must come from prepare_params(). Returns (B, 10) float32 logits (post-ReLU)."""
    x2d = x.reshape(-1, 28 * 28)
    batch = x2d.shape[0]

    # Batch tile: one grid step for small batches; 512-row tiles otherwise (>= 4 steps per
    # 2048 rows -> good 2-TC balance on v7x, fits every generation's scoped VMEM with f32 x:
    # (512, 784) f32 ~ 1.6 MB, double-buffered ~3.2 MB).
    if batch <= 512:
        tm = max(16, ((batch + 15) // 16) * 16)
    else:
        tm = 512
    grid = (pl.cdiv(batch, tm),)                    # ragged last block handled by Pallas masking

    cost = pl.CostEstimate(
        flops=2 * batch * (784 * 128 + 128 * 10),
        transcendentals=0,
        bytes_accessed=(batch * 784 * 4             # x (f32, streamed directly)
                        + 784 * 128 * 2             # w1 (bf16)
                        + 128 * 10 * 2              # w2 (bf16)
                        + 128 * 4 + 10 * 4          # biases (f32)
                        + batch * 10 * 4),          # narrow f32 output
    )

    out = pl.pallas_call(
        _mlp_kernel,
        out_shape=jax.ShapeDtypeStruct((batch, 10), jnp.float32),
        grid=grid,
        in_specs=[
            pl.BlockSpec((tm, 784), lambda i: (i, 0)),    # x: tiled over batch
            pl.BlockSpec((784, 128), lambda i: (0, 0)),   # w1: VMEM-resident across steps
            pl.BlockSpec((1, 128), lambda i: (0, 0)),     # b1
            pl.BlockSpec((128, 10), lambda i: (0, 0)),    # w2 (narrow N == full array dim)
            pl.BlockSpec((1, 10), lambda i: (0, 0)),      # b2
        ],
        out_specs=pl.BlockSpec((tm, 10), lambda i: (i, 0)),
        compiler_params=pltpu.CompilerParams(
            dimension_semantics=("parallel",),            # shard batch steps across TCs (v7x)
        ),
        cost_estimate=cost,
    )(x2d, w1_p, b1_p, w2_p, b2_p)

    return out


def init_params(key):
    """Deterministic init mimicking PyTorch nn.Linear default (U(-1/sqrt(fan_in), +))."""
    k1, k2, k3, k4 = jax.random.split(key, 4)
    bound1 = 1.0 / jnp.sqrt(784.0)
    bound2 = 1.0 / jnp.sqrt(100.0)
    w1 = jax.random.uniform(k1, (784, 100), jnp.float32, -bound1, bound1)
    b1 = jax.random.uniform(k2, (100,), jnp.float32, -bound1, bound1)
    w2 = jax.random.uniform(k3, (100, 10), jnp.float32, -bound2, bound2)
    b2 = jax.random.uniform(k4, (10,), jnp.float32, -bound2, bound2)
    return w1, b1, w2, b2


if __name__ == "__main__":
    key = jax.random.PRNGKey(0)
    k_params, k_x, k_x2 = jax.random.split(key, 3)
    w1, b1, w2, b2 = init_params(k_params)
    params = prepare_params(w1, b1, w2, b2)

    def ref_forward(x):
        # Plain-JAX reference with the same bf16 rounding the kernel applies to x / w1 / w2 / h.
        xb = x.reshape(-1, 784).astype(jnp.bfloat16).astype(jnp.float32)
        w1b = w1.astype(jnp.bfloat16).astype(jnp.float32)
        w2b = w2.astype(jnp.bfloat16).astype(jnp.float32)
        h = jnp.maximum(xb @ w1b + b1, 0.0)
        hb = h.astype(jnp.bfloat16).astype(jnp.float32)
        return jnp.maximum(hb @ w2b + b2, 0.0)

    # Small MNIST-shaped batch (single grid step path): (B=2, C=1, H=28, W=28) in NCHW.
    x = jax.random.normal(k_x, (2, 1, 28, 28), jnp.float32)
    out = jax.block_until_ready(net_student_forward(x, *params))
    assert out.shape == (2, 10)
    assert jnp.allclose(out, ref_forward(x), atol=1e-2, rtol=1e-2)

    # Larger batch exercising the tiled, multi-step path with a ragged last block (600 % 512 != 0).
    x_big = jax.random.normal(k_x2, (600, 1, 28, 28), jnp.float32)
    out_big = jax.block_until_ready(net_student_forward(x_big, *params))
    assert out_big.shape == (600, 10)
    assert jnp.allclose(out_big, ref_forward(x_big), atol=1e-2, rtol=1e-2)

    print("KERNEL_OK")
</pallas_src>

<mosaic_0001>
module attributes {stable_mosaic.version = 11 : i64} {
  func.func @_mlp_kernel(%arg0: i32, %arg1: memref<16x784xf32, #tpu.memory_space<vmem>>, %arg2: memref<784x128xbf16, #tpu.memory_space<vmem>>, %arg3: memref<1x128xf32, #tpu.memory_space<vmem>>, %arg4: memref<128x10xbf16, #tpu.memory_space<vmem>>, %arg5: memref<1x10xf32, #tpu.memory_space<vmem>>, %arg6: memref<16x10xf32, #tpu.memory_space<vmem>>) attributes {dimension_semantics = [#tpu.dimension_semantics<parallel>], iteration_bounds = array<i64: 1>, scalar_prefetch = 0 : i64, scratch_operands = 0 : i64, tpu.core_type = #tpu.core_type<tc>, window_params = [{transform_indices = @transform_0, window_bounds = array<i64: 16, 784>}, {pipeline_mode = #tpu.pipeline_mode<synchronous>, transform_indices = @transform_1, window_bounds = array<i64: 784, 128>}, {pipeline_mode = #tpu.pipeline_mode<synchronous>, transform_indices = @transform_2, window_bounds = array<i64: 1, 128>}, {pipeline_mode = #tpu.pipeline_mode<synchronous>, transform_indices = @transform_3, window_bounds = array<i64: 128, 10>}, {pipeline_mode = #tpu.pipeline_mode<synchronous>, transform_indices = @transform_4, window_bounds = array<i64: 1, 10>}, {transform_indices = @transform_5, window_bounds = array<i64: 16, 10>}]} {
    %c0 = arith.constant 0 : index
    %c0_0 = arith.constant 0 : index
    %0 = vector.load %arg1[%c0, %c0_0] : memref<16x784xf32, #tpu.memory_space<vmem>>, vector<16x784xf32>
    %1 = arith.truncf %0 : vector<16x784xf32> to vector<16x784xbf16>
    %c0_1 = arith.constant 0 : index
    %c0_2 = arith.constant 0 : index
    %2 = vector.load %arg2[%c0_1, %c0_2] : memref<784x128xbf16, #tpu.memory_space<vmem>>, vector<784x128xbf16>
    %cst = arith.constant dense<0.000000e+00> : vector<16x128xf32>
    %3 = tpu.matmul %1, %2, %cst {dimension_numbers = #tpu.dot_dimension_numbers<[1], [0], [0], [1], [0, 0, 1, 1], [], []>} : vector<16x784xbf16>, vector<784x128xbf16>, vector<16x128xf32> -> vector<16x128xf32>
    %c0_3 = arith.constant 0 : index
    %c0_4 = arith.constant 0 : index
    %4 = vector.load %arg3[%c0_3, %c0_4] : memref<1x128xf32, #tpu.memory_space<vmem>>, vector<1x128xf32>
    %5 = vector.broadcast %4 : vector<1x128xf32> to vector<16x128xf32>
    %6 = arith.addf %3, %5 : vector<16x128xf32>
    %cst_5 = arith.constant 0.000000e+00 : f32
    %7 = vector.broadcast %cst_5 : f32 to vector<16x128xf32>
    %8 = arith.maximumf %6, %7 : vector<16x128xf32>
    %9 = arith.truncf %8 : vector<16x128xf32> to vector<16x128xbf16>
    %c0_6 = arith.constant 0 : index
    %c0_7 = arith.constant 0 : index
    %10 = vector.load %arg4[%c0_6, %c0_7] : memref<128x10xbf16, #tpu.memory_space<vmem>>, vector<128x10xbf16>
    %cst_8 = arith.constant dense<0.000000e+00> : vector<16x10xf32>
    %11 = tpu.matmul %9, %10, %cst_8 {dimension_numbers = #tpu.dot_dimension_numbers<[1], [0], [0], [1], [0, 0, 1, 1], [], []>} : vector<16x128xbf16>, vector<128x10xbf16>, vector<16x10xf32> -> vector<16x10xf32>
    %c0_9 = arith.constant 0 : index
    %c0_10 = arith.constant 0 : index
    %12 = vector.load %arg5[%c0_9, %c0_10] : memref<1x10xf32, #tpu.memory_space<vmem>>, vector<1x10xf32>
    %13 = vector.broadcast %12 : vector<1x10xf32> to vector<16x10xf32>
    %14 = arith.addf %11, %13 : vector<16x10xf32>
    %cst_11 = arith.constant 0.000000e+00 : f32
    %15 = vector.broadcast %cst_11 : f32 to vector<16x10xf32>
    %16 = arith.maximumf %14, %15 : vector<16x10xf32>
    %c0_12 = arith.constant 0 : index
    %c0_13 = arith.constant 0 : index
    %17 = vector.load %arg6[%c0_12, %c0_13] : memref<16x10xf32, #tpu.memory_space<vmem>>, vector<16x10xf32>
    tpu.vector_store %arg6[%c0_12, %c0_13], %16 {strides = array<i32>} : memref<16x10xf32, #tpu.memory_space<vmem>>, vector<16x10xf32>,
    return
  }
  func.func @transform_0(%arg0: i32) -> (i32, i32) {
    %c0_i32 = arith.constant 0 : i32
    %c0_i32_0 = arith.constant 0 : i32
    return %arg0, %c0_i32 : i32, i32
  }
  func.func @transform_1(%arg0: i32) -> (i32, i32) {
    %c0_i32 = arith.constant 0 : i32
    %c0_i32_0 = arith.constant 0 : i32
    %c0_i32_1 = arith.constant 0 : i32
    return %c0_i32, %c0_i32_0 : i32, i32
  }
  func.func @transform_2(%arg0: i32) -> (i32, i32) {
    %c0_i32 = arith.constant 0 : i32
    %c0_i32_0 = arith.constant 0 : i32
    %c0_i32_1 = arith.constant 0 : i32
    return %c0_i32, %c0_i32_0 : i32, i32
  }
  func.func @transform_3(%arg0: i32) -> (i32, i32) {
    %c0_i32 = arith.constant 0 : i32
    %c0_i32_0 = arith.constant 0 : i32
    %c0_i32_1 = arith.constant 0 : i32
    return %c0_i32, %c0_i32_0 : i32, i32
  }
  func.func @transform_4(%arg0: i32) -> (i32, i32) {
    %c0_i32 = arith.constant 0 : i32
    %c0_i32_0 = arith.constant 0 : i32
    %c0_i32_1 = arith.constant 0 : i32
    return %c0_i32, %c0_i32_0 : i32, i32
  }
  func.func @transform_5(%arg0: i32) -> (i32, i32) {
    %c0_i32 = arith.constant 0 : i32
    %c0_i32_0 = arith.constant 0 : i32
    return %arg0, %c0_i32 : i32, i32
  }
}

</mosaic_0001>

<bundles_post_ra>
// kernel: net_student_forward.1
= control target key start
LH: loop header
LB: loop body
LE: loop exit
PB: predicated region body
PF: predicated region fallthrough
CT: control target
= control target key end

     0   :  { %10 = vsyncpa [#allocation3], 0  ;;  %s1408_s0 = inlined_call_operand.vmem [shape: f32[2,784], index: 0, kind: input, shape index: {}]   ;;  %s1409_s1 = inlined_call_operand.hbm [shape: bf16[784,128], index: 1, kind: input, shape index: {}]   ;;  %s1410_s2 = inlined_call_operand.vmem [shape: f32[1,128], index: 2, kind: input, shape index: {}]   ;;  %s1411_s3 = inlined_call_operand.vmem [shape: bf16[128,10], index: 3, kind: input, shape index: {}]   ;;  %s1412_s4 = inlined_call_operand.vmem [shape: f32[1,10], index: 4, kind: input, shape index: {}]   ;;  %s1413_s5 = inlined_call_operand.hbm [shape: f32[2,10], index: 5, kind: output, shape index: {}]  }
   0x1   :  { %11 = vsyncpa [#allocation4], 0  ;;  %s1236_s18 = smov [#allocation2]   ;;  %s1188_s22 = scalar_lea.hbm %s1409_s1, 6272 }
   0x2   :  { %s19_s19 = sshll.u32 %s1236_s18, 4  ;;  %p1189_p0 = scmp.ne.s32.totalorder %s1409_s1, %s1188_s22  ;;  %s20_s19 = int_to_ptr.vmem [resolvable:$true] %s19_s19 }
   0x3   :  { %p1192_p1 = scmp.lt.u32.totalorder %s1188_s22, %s1409_s1 }
   0x5   :  { %p1194_p2 = pnand %p1192_p1, %p1189_p0 }
   0x7   :  { %1197 = shalt.err (!%p1194_p2)
}
   0x8   :  { %s1198_s27 = scalar_lea.vmem %s20_s19, 6272  ;;  %p1203_p4 = scmp.lt.s32.totalorder %s20_s19, %s20_s19 }
   0x9   :  { %p1199_p3 = scmp.ne.s32.totalorder %s20_s19, %s1198_s27  ;;  %p1204_p5 = scmp.lt.s32.totalorder %s1198_s27, %s1198_s27 }
   0xb   :  { %p1205_p6 = por %p1204_p5, %p1203_p4 }
   0xd   :  { %p1206_p7 = pnand %p1205_p6, %p1199_p3 }
   0xf   :  { %1209 = shalt.err (!%p1206_p7)
}
  0x10   :  { %s1237_s28 = smov 64   ;;  %s1238_s29 = smov 4  }
  0x11   :  { %25 = dma.hbm_to_vmem [thread:$0]  %s1409_s1, 6272, %s20_s19, [#allocation3], %s1237_s28, %s1237_s28, %s1238_s29  }
  0x12   :  { %1232 = dma.done.wait [#allocation3], 6272  }
  0x13   :  { %1233 = vsyncadd [#allocation3], 4294961024  ;;  %v1107_v0 = vld [vmem:[#allocation2 + $0x40] sm:$0xff]   ;;  %v1111_v4 = vld [vmem:[#allocation2 + $0x48] sm:$0xff]   ;;  %v1239_v24 = vmov 1983009808   ;;  %v75_v26 = vlaneseq }
  0x14   :  { %v1108_v1 = vld [vmem:[#allocation2] sm:$0xff]   ;;  %995 = vmatprep.subr.bf16.mxu0 %v1107_v0  ;;  %v1112_v5 = vld [vmem:[#allocation2 + $0x8] sm:$0xff]   ;;  %v1115_v8 = vld [vmem:[#allocation2 + $0x50] sm:$0xff]   ;;  %v73_v25 = vunpack.c.l.s4 %v1239_v24  ;;  %v1240_v58 = vmov 0.0   ;;  %vm1241_vm0 = vmmov 0   ;;  %vm630_vm1 = vcmask 130048  }
  0x15   :  { %v1109_v2 = vld [vmem:[#allocation2 + $0xc0] sm:$0xff]   ;;  %996 = vmatpush3.bf16.msra.mxu0 %v1108_v1  ;;  %v1113_v6 = vld [vmem:[#allocation2 + $0xc8] sm:$0xff]   ;;  %v1116_v9 = vld [vmem:[#allocation2 + $0x10] sm:$0xff]   ;;  %v76_v32 = vshrl.u32 %v75_v26, 7  ;;  %vm915_vm2 = vcmask 80896  }
  0x16   :  { %v1110_v3 = vld [vmem:[#allocation2 + $0x80] sm:$0xff]   ;;  %1017 = vmatprep.subr.bf16.mxu1 %v1109_v2  ;;  %997 = vmatprep.subr.bf16.mxu0 %v1111_v4  ;;  %v1114_v7 = vld [vmem:[#allocation2 + $0x88] sm:$0xff]   ;;  %v1117_v10 = vld [vmem:[#allocation2 + $0xd0] sm:$0xff]   ;;  %v74_v31 = vunpack.c.0.s8 %v73_v25 }
  0x17   :  { %1018 = vmatpush3.bf16.msra.mxu1 %v1110_v3  ;;  %v1118_v11 = vld [vmem:[#allocation2 + $0x90] sm:$0xff]   ;;  %v1119_v12 = vld [vmem:[#allocation2 + $0x58] sm:$0xff]   ;;  %v1123_v16 = vld [vmem:[#allocation2 + $0x60] sm:$0xff]  }
  0x18   :  { %1019 = vmatprep.subr.bf16.mxu1 %v1113_v6  ;;  %v1120_v13 = vld [vmem:[#allocation2 + $0x18] sm:$0xff]   ;;  %v1124_v17 = vld [vmem:[#allocation2 + $0x20] sm:$0xff]   ;;  %v1127_v20 = vld [vmem:[#allocation2 + $0x68] sm:$0xff]   ;;  %v1287_v36 = vsub.s32 %v74_v31, %v76_v32 }
  0x19   :  { %998 = vmatpush3.bf16.msra.mxu0 %v1112_v5  ;;  %v1121_v14 = vld [vmem:[#allocation2 + $0xd8] sm:$0xff]   ;;  %v1125_v18 = vld [vmem:[#allocation2 + $0xe0] sm:$0xff]   ;;  %v1128_v21 = vld [vmem:[#allocation2 + $0x28] sm:$0xff]  }
  0x1a   :  { %999 = vmatprep.subr.bf16.mxu0 %v1115_v8  ;;  %v1122_v15 = vld [vmem:[#allocation2 + $0x98] sm:$0xff]   ;;  %v1126_v19 = vld [vmem:[#allocation2 + $0xa0] sm:$0xff]   ;;  %v1129_v22 = vld [vmem:[#allocation2 + $0xe8] sm:$0xff]  }
  0x1b   :  { %1020 = vmatpush3.bf16.msra.mxu1 %v1114_v7  ;;  %v1130_v23 = vld [vmem:[#allocation2 + $0xa8] sm:$0xff]   ;;  %v1131_v27 = vld [vmem:[#allocation2 + $0x70] sm:$0xff]   ;;  %v1135_v33 = vld [vmem:[#allocation2 + $0x78] sm:$0xff]  }
  0x1c   :  { %1021 = vmatprep.subr.bf16.mxu1 %v1117_v10  ;;  %v1132_v28 = vld [vmem:[#allocation2 + $0x30] sm:$0xff]   ;;  %v1136_v34 = vld [vmem:[#allocation2 + $0x38] sm:$0xff]   ;;  %v1147_v46 = vld [vmem:[#allocation2 + $0x140] sm:$0xff]  }
  0x1d   :  { %1000 = vmatpush3.bf16.msra.mxu0 %v1116_v9  ;;  %v1133_v29 = vld [vmem:[#allocation2 + $0xf0] sm:$0xff]   ;;  %v1137_v35 = vld [vmem:[#allocation2 + $0xf8] sm:$0xff]   ;;  %v1152_v62 = vld [vmem:[#allocation2 + $0x100] sm:$0xff]  }
  0x1e   :  { %1001 = vmatprep.subr.bf16.mxu0 %v1119_v12  ;;  %v1134_v30 = vld [vmem:[#allocation2 + $0xb0] sm:$0xff]   ;;  %v1140_v38 = vld [vmem:[%s1408_s0 + $0x1c] ss:$14 sps:$4 sm:$0xff]   ;;  %v1142_v39 = vld [vmem:[%s1408_s0 + $0x38] ss:$14 sps:$4 sm:$0xff]  }
  0x1f   :  { %1022 = vmatpush3.bf16.msra.mxu1 %v1118_v11  ;;  %v1138_v37 = vld [vmem:[%s1408_s0] ss:$14 sps:$4 sm:$0xff]   ;;  %v1146_v42 = vld [vmem:[#allocation2 + $0xb8] sm:$0xff]   ;;  %v92_v43 = vrot.slane %v1140_v38, %v1287_v36  ;;  %v149_v44 = vrot.slane %v1142_v39, %v1287_v36  ;;  %v1148_v47 = vld [vmem:[%s1408_s0 + $0x4] ss:$14 sps:$4 sm:$0xff]  }
  0x20   :  { %1023 = vmatprep.subr.bf16.mxu1 %v1121_v14  ;;  %v1144_v40 = vld [vmem:[%s1408_s0 + $0x54] ss:$14 sps:$4 sm:$0xff]   ;;  %v78_v41 = vrot.slane %v1138_v37, %v1287_v36  ;;  %v1150_v49 = vld [vmem:[%s1408_s0 + $0x3c] ss:$14 sps:$4 sm:$0xff]   ;;  %v1151_v54 = vld [vmem:[%s1408_s0 + $0x58] ss:$14 sps:$4 sm:$0xff]   ;;  %v85_v55 = vrot.slane %v1148_v47, %v1287_v36 }
  0x21   :  { %1002 = vmatpush3.bf16.msra.mxu0 %v1120_v13  ;;  %v163_v45 = vrot.slane %v1144_v40, %v1287_v36  ;;  %v1149_v48 = vld [vmem:[%s1408_s0 + $0x20] ss:$14 sps:$4 sm:$0xff]   ;;  %v156_v57 = vrot.slane %v1150_v49, %v1287_v36  ;;  %v170_v61 = vrot.slane %v1151_v54, %v1287_v36  ;;  %v1157_v9 = vld [vmem:[#allocation2 + $0x158] sm:$0xff]  }
  0x22   :  { %1003 = vmatprep.subr.bf16.mxu0 %v1123_v16  ;;  %v101_v50 = vcombine.high %v78_v41, %v92_v43  ;;  %v100_v52 = vcombine.low %v78_v41, %v92_v43  ;;  %v99_v56 = vrot.slane %v1149_v48, %v1287_v36  ;;  %v1153_v1 = vld [vmem:[#allocation2 + $0x148] sm:$0xff]   ;;  %v1155_v7 = vld [vmem:[#allocation2 + $0x150] sm:$0xff]   ;;  %v1158_v10 = vld [vmem:[#allocation2 + $0x118] sm:$0xff]  }
  0x23   :  { %1024 = vmatpush3.bf16.msra.mxu1 %v1122_v15  ;;  %v172_v51 = vcombine.high %v149_v44, %v163_v45  ;;  %v171_v53 = vcombine.low %v149_v44, %v163_v45  ;;  %v174_v2 = vcombine.high %v156_v57, %v170_v61  ;;  %v173_v3 = vcombine.low %v156_v57, %v170_v61  ;;  %v1154_v6 = vld [vmem:[#allocation2 + $0x108] sm:$0xff]   ;;  %v1156_v8 = vld [vmem:[#allocation2 + $0x110] sm:$0xff]   ;;  %v1159_v11 = vld [vmem:[#allocation2 + $0x160] sm:$0xff]  }
  0x24   :  { %1025 = vmatprep.subr.bf16.mxu1 %v1125_v18  ;;  %v103_v63 = vcombine.high %v85_v55, %v99_v56  ;;  %v102_v0 = vcombine.low %v85_v55, %v99_v56  ;;  %v1160_v12 = vld [vmem:[#allocation2 + $0x120] sm:$0xff]   ;;  %v1161_v14 = vld [vmem:[#allocation2 + $0x168] sm:$0xff]   ;;  %v1163_v24 = vld [vmem:[#allocation2 + $0x170] sm:$0xff]  }
  0x25   :  { %1004 = vmatpush3.bf16.msra.mxu0 %v1124_v17  ;;  %v225_v59 = vpack.c.bf16 %v172_v51, %v101_v50  ;;  %v224_v60 = vpack.c.bf16 %v171_v53, %v100_v52  ;;  %v1167_v13 = vld [vmem:[#allocation2 + $0x180] sm:$0xff]   ;;  %v1168_v15 = vld [vmem:[%s1408_s0 + $0x8] ss:$14 sps:$4 sm:$0xff]   ;;  %v1170_v16 = vld [vmem:[%s1408_s0 + $0xc] ss:$14 sps:$4 sm:$0x33]  }
  0x26   :  { %1005 = vmatprep.subr.bf16.mxu0 %v1127_v20  ;;  %v227_v4 = vpack.c.bf16 %v174_v2, %v103_v63  ;;  %v226_v5 = vpack.c.bf16 %v173_v3, %v102_v0  ;;  %v1171_v17 = vld [vmem:[%s1408_s0 + $0x24] ss:$14 sps:$4 sm:$0xff]   ;;  %v1173_v18 = vld [vmem:[%s1408_s0 + $0x28] ss:$14 sps:$4 sm:$0x33]   ;;  %v114_v20 = vrot.slane %v1168_v15, %v1287_v36  ;;  %v1166_v44 = vld [vmem:[#allocation2 + $0x138] sm:$0xff]  }
  0x27   :  { %1026 = vmatpush3.bf16.msra.mxu1 %v1126_v19  ;;  %666 = vmatprep.mubr.bf16.mxu0 %v225_v59  ;;  %v1162_v19 = vld [vmem:[#allocation2 + $0x128] sm:$0xff]   ;;  %v128_v25 = vrot.slane %v1171_v17, %v1287_v36  ;;  %v135_v26 = vrot.slane %v1173_v18, %v1287_v36  ;;  %v1164_v31 = vld [vmem:[#allocation2 + $0x130] sm:$0xff]   ;;  %v1180_v45 = vld [vmem:[%s1411_s3] sm:$0xff]  }
  0x28   :  { %1027 = vmatprep.subr.bf16.mxu1 %v1129_v22  ;;  %707 = vmatprep.mubr.bf16.mxu1 %v227_v4  ;;  %v1174_v22 = vld [vmem:[%s1408_s0 + $0x40] ss:$14 sps:$4 sm:$0xff]   ;;  %v1183_v48 = vld [vmem:[%s1411_s3 + $0x18] sm:$0xff]  }
  0x29   :  { %1006 = vmatpush3.bf16.msra.mxu0 %v1128_v21  ;;  %v121_v21 = vrot.slane %v1170_v16, %v1287_v36  ;;  %v137_v32 = vcombine.high %v114_v20, %v128_v25  ;;  %v1182_v47 = vld [vmem:[%s1411_s3 + $0x10] sm:$0xff]   ;;  %v1184_v49 = vld [vmem:[%s1411_s3 + $0x20] sm:$0xff]   ;;  %v1185_v50 = vld [vmem:[%s1411_s3 + $0x28] sm:$0xff]  }
  0x2a   :  { %1007 = vmatprep.subr.bf16.mxu0 %v1131_v27  ;;  %v1177_v27 = vld [vmem:[%s1408_s0 + $0x5c] ss:$14 sps:$4 sm:$0xff]   ;;  %v1186_v51 = vld [vmem:[%s1411_s3 + $0x30] sm:$0xff]   ;;  %v935_v54 = vld [vmem:[%s1410_s2] ss:$0 sm:$0xff] }
  0x2b   :  { %1028 = vmatpush3.bf16.msra.mxu1 %v1130_v23  ;;  %v1176_v23 = vld [vmem:[%s1408_s0 + $0x44] ss:$14 sps:$4 sm:$0x33]   ;;  %v138_v37 = vcombine.low %v121_v21, %v135_v26  ;;  %v1187_v52 = vld [vmem:[%s1411_s3 + $0x38] sm:$0xff]  }
  0x2c   :  { %1029 = vmatprep.subr.bf16.mxu1 %v1133_v29  ;;  %v185_v29 = vrot.slane %v1174_v22, %v1287_v36 }
  0x2d   :  { %1008 = vmatpush3.bf16.msra.mxu0 %v1132_v28  ;;  %v1179_v28 = vld [vmem:[%s1408_s0 + $0x60] ss:$14 sps:$4 sm:$0x33]  }
  0x2e   :  { %1009 = vmatprep.subr.bf16.mxu0 %v1135_v33  ;;  %v199_v33 = vrot.slane %v1177_v27, %v1287_v36 }
  0x2f   :  { %1030 = vmatpush3.bf16.msra.mxu1 %v1134_v30  ;;  %v192_v30 = vrot.slane %v1176_v23, %v1287_v36  ;;  %v986_v23 = vld [vmem:[%s1412_s4] ss:$0 sm:$0xff] }
  0x30   :  { %1031 = vmatprep.subr.bf16.mxu1 %v1137_v35  ;;  %v1165_v35 = vld [vmem:[#allocation2 + $0x178] sm:$0xff]   ;;  %v208_v38 = vcombine.high %v185_v29, %v199_v33  ;;  %v207_v43 = vcombine.low %v185_v29, %v199_v33 }
  0x31   :  { %1010 = vmatpush3.bf16.msra.mxu0 %v1136_v34  ;;  %v206_v34 = vrot.slane %v1179_v28, %v1287_v36 }
  0x32   :  { %1039 = vmatprep.subr.bf16.mxu0 %v1147_v46  ;;  %v229_v40 = vpack.c.bf16 %v208_v38, %v137_v32  ;;  %v1181_v46 = vld [vmem:[%s1411_s3 + $0x8] sm:$0xff]  }
  0x33   :  { %1032 = vmatpush3.bf16.msra.mxu1 %v1146_v42  ;;  %v209_v39 = vcombine.low %v192_v30, %v206_v34  ;;  %v136_v42 = vcombine.low %v114_v20, %v128_v25 }
  0x34   :  { %1072 = vmatprep.subr.bf16.mxu1 %v1240_v58  ;;  %667 = vmatmul.mubr.bf16.vlgmr.msra.gmra.mrb[0].mxu0 %v224_v60 }
  0x35   :  { %1040 = vmatpush3.bf16.msra.mxu0 %v1152_v62  ;;  %v230_v41 = vpack.c.bf16 %v209_v39, %v138_v37  ;;  %748 = vmatprep.mubr.bf16.mxu0 %v229_v40  ;;  %v228_v36 = vpack.c.bf16 %v207_v43, %v136_v42 }
  0x36   :  { %1041 = vmatprep.subr.bf16.mxu0 %v1153_v1  ;;  %708 = vmatmul.mubr.bf16.vlgmr.msra.gmra.mrb[0].mxu1 %v226_v5 }
  0x37   :  { %1074 = vmatprep.mubr.msk.bf16.mxu1 %vm1241_vm0, %v1240_v58  ;;  %1073 = vmatpush3.bf16.msra.mxu1 %v1167_v13 }
  0x38   :  { %1078 = vmatprep.subr.bf16.mxu1 %v1240_v58 }
  0x39   :  { %1042 = vmatpush3.bf16.msra.mxu0 %v1154_v6 }
  0x3a   :  { %1043 = vmatprep.subr.bf16.mxu0 %v1155_v7 }
  0x3d   :  { %1044 = vmatpush3.bf16.msra.mxu0 %v1156_v8 }
  0x3e   :  { %1045 = vmatprep.subr.bf16.mxu0 %v1157_v9  ;;  %1075 = vmatmul.mubr.msk.bf16.vlgmr.msra.gmra.mrb[4].mxu1 %vm630_vm1, %v230_v41 }
  0x3f   :  { %1094 = vmatprep.mubr.msk.bf16.mxu1 %vm1241_vm0, %v1240_v58  ;;  %1079 = vmatpush3.bf16.msra.mxu1 %v1180_v45 }
  0x40   :  { %1080 = vmatprep.subr.bf16.mxu1 %v1240_v58 }
  0x41   :  { %1046 = vmatpush3.bf16.msra.mxu0 %v1158_v10 }
  0x42   :  { %1047 = vmatprep.subr.bf16.mxu0 %v1159_v11 }
  0x43   :  { %1081 = vmatpush3.bf16.msra.mxu1 %v1181_v46 }
  0x44   :  { %1082 = vmatprep.subr.bf16.mxu1 %v1240_v58 }
  0x45   :  { %1048 = vmatpush3.bf16.msra.mxu0 %v1160_v12 }
  0x46   :  { %1049 = vmatprep.subr.bf16.mxu0 %v1161_v14 }
  0x47   :  { %1083 = vmatpush3.bf16.msra.mxu1 %v1182_v47 }
  0x48   :  { %1084 = vmatprep.subr.bf16.mxu1 %v1240_v58 }
  0x49   :  { %1050 = vmatpush3.bf16.msra.mxu0 %v1162_v19 }
  0x4a   :  { %1051 = vmatprep.subr.bf16.mxu0 %v1163_v24 }
  0x4b   :  { %1085 = vmatpush3.bf16.msra.mxu1 %v1183_v48 }
  0x4c   :  { %1086 = vmatprep.subr.bf16.mxu1 %v1240_v58 }
  0x4d   :  { %1052 = vmatpush3.bf16.msra.mxu0 %v1164_v31 }
  0x4e   :  { %1053 = vmatprep.subr.bf16.mxu0 %v1165_v35 }
  0x4f   :  { %1087 = vmatpush3.bf16.msra.mxu1 %v1184_v49 }
  0x50   :  { %1088 = vmatprep.subr.bf16.mxu1 %v1240_v58 }
  0x51   :  { %1054 = vmatpush3.bf16.msra.mxu0 %v1166_v44 }
  0x53   :  { %1089 = vmatpush3.bf16.msra.mxu1 %v1185_v50 }
  0x54   :  { %749 = vmatmul.mubr.bf16.vlgmr.msra.gmra.mrb[4].mxu0 %v228_v36  ;;  %1090 = vmatprep.subr.bf16.mxu1 %v1240_v58 }
  0x57   :  { %1091 = vmatpush3.bf16.msra.mxu1 %v1186_v51 }
  0x58   :  { %1092 = vmatprep.subr.bf16.mxu1 %v1240_v58 }
  0x5b   :  { %1093 = vmatpush3.bf16.msra.mxu1 %v1187_v52 }
 0x107   :  { %v1011_v53 = vpop.f32.mrb[0].mxu0 }
 0x108   :  { %v1012_v55 = vpop.f32.mrb[1].mxu0 }
 0x109   :  { %v1013_v56 = vadd.f32 %v1012_v55, %v1011_v53  ;;  %v1014_v57 = vpop.f32.mrb[2].mxu0  ;;  %v1033_v61 = vpop.f32.mrb[0].mxu1 }
 0x10a   :  { %v1015_v59 = vpop.f32.mrb[3].mxu0  ;;  %v1034_v63 = vpop.f32.mrb[1].mxu1 }
 0x10b   :  { %v669_v60 = vadd.f32 %v1013_v56, %v935_v54  ;;  %v1016_v62 = vadd.f32 %v1015_v59, %v1014_v57  ;;  %v1035_v58 = vadd.f32 %v1034_v63, %v1033_v61  ;;  %v1036_v1 = vpop.f32.mrb[2].mxu1 }
 0x10c   :  { %v1037_v2 = vpop.f32.mrb[3].mxu1 }
 0x10d   :  { %v672_v0 = vadd.f32 %v1016_v62, %v935_v54  ;;  %v710_v3 = vadd.f32 %v1035_v58, %v669_v60  ;;  %v1038_v4 = vadd.f32 %v1037_v2, %v1036_v1 }
 0x10f   :  { %v713_v5 = vadd.f32 %v1038_v4, %v672_v0 }
 0x111   :  { %v791_v6 = vpop.f32.mrb[4].mxu1 }
 0x112   :  { %v1076_v7 = vpop.f32.mrb[5].mxu1 }
 0x113   :  { %v794_v8 = vpop.f32.mrb[6].mxu1 }
 0x114   :  { %v1077_v9 = vpop.f32.mrb[7].mxu1 }
 0x127   :  { %v1055_v10 = vpop.f32.mrb[4].mxu0 }
 0x128   :  { %v1056_v11 = vpop.f32.mrb[5].mxu0 }
 0x129   :  { %v1057_v12 = vadd.f32 %v1056_v11, %v1055_v10  ;;  %v1058_v13 = vpop.f32.mrb[6].mxu0 }
 0x12a   :  { %v1059_v14 = vpop.f32.mrb[7].mxu0 }
 0x12b   :  { %v751_v15 = vadd.f32 %v1057_v12, %v710_v3  ;;  %v1060_v16 = vadd.f32 %v1059_v14, %v1058_v13 }
 0x12d   :  { %v792_v17 = vadd.f32 %v791_v6, %v751_v15  ;;  %v754_v18 = vadd.f32 %v1060_v16, %v713_v5 }
 0x12f   :  { %v795_v19 = vadd.f32 %v794_v8, %v754_v18  ;;  %v798_v20 = vmax.f32 %v792_v17, 0.0 }
 0x131   :  { %v799_v21 = vmax.f32 %v795_v19, 0.0 }
 0x133   :  { %v800_v22 = vpack.c.bf16 %v799_v21, %v798_v20 }
 0x135   :  { %1095 = vmatmul.mubr.bf16.vlgmr.msra.gmra.mrb[8].mxu1 %v800_v22 }
 0x208   :  { %v906_v24 = vpop.f32.mrb[8].mxu1 }
 0x209   :  { %v907_v25 = vadd.f32 %v986_v23, %v906_v24  ;;  %v1096_v26 = vpop.f32.mrb[9].mxu1 }
 0x20a   :  { %v909_v27 = vpop.f32.mrb[10].mxu1 }
 0x20b   :  { %v913_v28 = vmax.f32 %v907_v25, 0.0  ;;  %v910_v29 = vadd.f32 %v986_v23, %v909_v27  ;;  %v1097_v30 = vpop.f32.mrb[11].mxu1 }
 0x20d   :  { %916 = vst.msk [vmem:[#allocation5] sm:$0xff] %vm915_vm2, %v913_v28  ;;  %v914_v31 = vmax.f32 %v910_v29, 0.0 }
 0x20f   :  { %917 = vst.msk [vmem:[#allocation5 + $0x8] sm:$0xff] %vm915_vm2, %v914_v31 }
 0x210   :  { %922 = vsyncadd [#allocation4], 224  ;;  %s1242_s29 = smov [#allocation5]  }
 0x211   :  { %s923_s30 = sshll.u32 %s1242_s29, 4  ;;  %s924_s30 = int_to_ptr.vmem [resolvable:$true] %s923_s30 }
 0x212   :  { %s1210_s6 = scalar_lea.vmem %s924_s30, 32  ;;  %s1214_s1 = scalar_lea.vmem %s924_s30, 256 }
 0x213   :  { %p1211_p8 = scmp.ne.s32.totalorder %s924_s30, %s1210_s6  ;;  %p1215_p9 = scmp.lt.s32.totalorder %s924_s30, %s924_s30 }
 0x214   :  { %p1216_p10 = scmp.lt.s32.totalorder %s1214_s1, %s1210_s6 }
 0x216   :  { %p1217_p11 = por %p1216_p10, %p1215_p9 }
 0x218   :  { %p1218_p12 = pnand %p1217_p11, %p1211_p8 }
 0x21a   :  { %1221 = shalt.err (!%p1218_p12)
}
 0x21b   :  { %s1222_s8 = scalar_lea.hbm %s1413_s5, 32 }
 0x21c   :  { %p1223_p13 = scmp.ne.s32.totalorder %s1413_s5, %s1222_s8  ;;  %p1226_p0 = scmp.lt.u32.totalorder %s1222_s8, %s1413_s5 }
 0x21e   :  { %p1228_p1 = pnand %p1226_p0, %p1223_p13 }
 0x220   :  { %1231 = shalt.err (!%p1228_p1)
}
 0x221   :  { %s1243_s12 = smov 32   ;;  %s1244_s13 = smov 2  }
 0x222   :  { %929 = dma.vmem_to_hbm [thread:$0]  %s924_s30, 32, %s1413_s5, [#allocation4], %s1243_s12, %s1243_s12, %s1244_s13  }
 0x223   :  { %1234 = dma.done.wait [#allocation4], 256  }
 0x224   :  { %1235 = vsyncadd [#allocation4], 4294967040 }
 0x225   :  { %933 = vsyncpa [#allocation3], 1 }
 0x226   :  { %934 = vsyncpa [#allocation4], 1 }

</bundles_post_ra>
